<compile_context>
chip_gen: v6e
topology: v6e:2x2x1
jax: 0.10.0
libtpu: 0.0.40
codegen_flags: <defaults>
</compile_context>

<pallas_src>
import jax
import jax.numpy as jnp
import numpy as np
from jax import lax
from jax.experimental import pallas as pl
from jax.experimental.pallas import tpu as pltpu

VOCAB = 50
EMBED = 16
HIDDEN = 32
LAYERS = 2
PAD = 0          # padding_idx
BATCH = 4
SEQ = 8          # context.max_seq_len


def make_rnn_stack_kernel(num_layers, seq_len, b_pad, hidden, vocab_pad):
    """Kernel on time-major, batch-padded data (Bp = b_pad rows per step)."""
    n_w = 2 + 3 * (num_layers - 1)

    def kernel(*refs):
        tok_ref = refs[0]           # (T*Bp, 1) int32 time-major tokens
        mask_ref = refs[1]          # (T*Bp, H) f32 validity mask (pre-broadcast)
        tproj_ref = refs[2]         # (Vp, H)   f32 embed_table @ W_ih0 (zero-padded)
        w_refs = refs[3:3 + n_w]    # whh0, b0, then per extra layer: wih, whh, b
        feat_ref = refs[3 + n_w]    # (Bp, T*L*H) lane-dense features
        hn_ref = refs[4 + n_w]      # (L*Bp, H)   final hiddens
        x_scr = refs[5 + n_w]       # (T*Bp, H)   inter-layer activation scratch

        # Fused embedding + layer-0 input projection: one-hot against a
        # lane-aligned (Vp = 128) contraction dim, single MXU matmul below.
        tok = tok_ref[...]                                           # (T*Bp, 1)
        onehot = (lax.broadcasted_iota(jnp.int32, (seq_len * b_pad, vocab_pad), 1)
                  == tok).astype(jnp.float32)                        # (T*Bp, Vp)

        mask = mask_ref[...]                                         # (T*Bp, H)
        notm = 1.0 - mask             # computed once; no per-step broadcasts

        # hidden carried across layers (layer i final -> layer i+1 initial)
        h = jnp.zeros((b_pad, hidden), jnp.float32)

        w_idx = 0
        for layer in range(num_layers):
            if layer == 0:
                whh = w_refs[0][...]
                bias = w_refs[1][...]
                # fused embedding lookup + input projection, all timesteps at once
                xproj = jnp.dot(onehot, tproj_ref[...],
                                preferred_element_type=jnp.float32) + bias
                w_idx = 2
            else:
                wih = w_refs[w_idx][...]
                whh = w_refs[w_idx + 1][...]
                bias = w_refs[w_idx + 2][...]
                w_idx += 3
                # hoisted input projection of the previous layer's outputs
                xproj = jnp.dot(x_scr[...], wih,
                                preferred_element_type=jnp.float32) + bias

            # Serial recurrence: only h @ W_hh + tanh stays on the critical path.
            # TODO(synk): weight-stationary W_hh (matmul_push_rhs/acc_lhs/pop).
            for t in range(seq_len):                  # fully unrolled (static T)
                lo = t * b_pad
                h_new = jnp.tanh(
                    xproj[lo:lo + b_pad, :]
                    + jnp.dot(h, whh, preferred_element_type=jnp.float32))
                m = mask[lo:lo + b_pad, :]
                o_t = m * h_new                                      # padded -> 0
                h = o_t + notm[lo:lo + b_pad, :] * h                 # freeze past len
                # store-as-you-go: static lane-offset store, spread over the loop
                off = (t * num_layers + layer) * hidden
                feat_ref[:, off:off + hidden] = o_t
                if layer + 1 < num_layers:
                    x_scr[lo:lo + b_pad, :] = o_t
            hn_ref[layer * b_pad:(layer + 1) * b_pad, :] = h

    return kernel


@jax.jit
def sequence_model_full_feature_extractor(x_tokens, embed_table, layer_weights):
    """x_tokens: (B, T) int32 token ids.

    Returns (features (B, T, L*H), h_n (L, B, H)) — same shapes/layout as the
    PyTorch module with a unidirectional nn.RNN model_class.
    """
    B, T = x_tokens.shape
    L = len(layer_weights)
    H = layer_weights[0][1].shape[0]
    V, E = embed_table.shape
    Bp = ((B + 7) // 8) * 8                      # pad batch to a sublane group
    Vp = ((V + 127) // 128) * 128                # lane-align the one-hot contraction

    x = x_tokens.astype(jnp.int32)
    seq_lengths = jnp.sum((x != PAD).astype(jnp.int32), axis=1)                   # (B,)
    mask_tb = (jnp.arange(T)[:, None] < seq_lengths[None, :]).astype(jnp.float32)  # (T, B)

    # tiny time-major, batch-padded kernel inputs (padding rows fully masked)
    tok_tm = jnp.zeros((T, Bp), jnp.int32).at[:, :B].set(x.T)
    mask_tm = jnp.zeros((T, Bp), jnp.float32).at[:, :B].set(mask_tb)
    tok_flat = tok_tm.reshape(T * Bp, 1)
    # mask pre-broadcast to full hidden width (done once here, reused by both layers)
    mask_flat = jnp.broadcast_to(mask_tm.reshape(T * Bp, 1), (T * Bp, H))

    # embedding fused with layer-0 input weights: (V, E) @ (E, H) -> (Vp, H)
    wih0, whh0, b0 = layer_weights[0]
    tproj = jnp.zeros((Vp, H), jnp.float32).at[:V, :].set(
        jnp.dot(embed_table.astype(jnp.float32), wih0.astype(jnp.float32)))

    flat_w = [whh0.astype(jnp.float32), b0.astype(jnp.float32)]
    for wih, whh, b in layer_weights[1:]:
        flat_w += [wih.astype(jnp.float32), whh.astype(jnp.float32),
                   b.astype(jnp.float32)]

    n_in = 3 + len(flat_w)
    out_shape = (jax.ShapeDtypeStruct((Bp, T * L * H), jnp.float32),
                 jax.ShapeDtypeStruct((L * Bp, H), jnp.float32))

    feat_flat, hn_flat = pl.pallas_call(
        make_rnn_stack_kernel(L, T, Bp, H, Vp),
        out_shape=out_shape,
        in_specs=[pl.BlockSpec(memory_space=pltpu.MemorySpace.VMEM)] * n_in,
        out_specs=(pl.BlockSpec(memory_space=pltpu.MemorySpace.VMEM),
                   pl.BlockSpec(memory_space=pltpu.MemorySpace.VMEM)),
        scratch_shapes=[pltpu.VMEM((T * Bp, H), jnp.float32)],
    )(tok_flat, mask_flat, tproj, *flat_w)

    # cheap un-pack of the lane-dense outputs (reshape + slice only, fused by jit)
    features = feat_flat.reshape(Bp, T, L * H)[:B]           # (B, T, L*H)
    h_n = hn_flat.reshape(L, Bp, H)[:, :B, :]                # (L, B, H)
    return features, h_n


def reference(x_np, embed_np, layer_weights_np):
    """Pure numpy reference of the module's forward (unidirectional RNN)."""
    B, T = x_np.shape
    H = layer_weights_np[0][1].shape[0]
    lengths = (x_np != PAD).sum(axis=1)
    inp = embed_np[x_np].astype(np.float32)                        # (B, T, E)
    h = np.zeros((B, H), np.float32)
    feats, hns = [], []
    for (wih, whh, b) in layer_weights_np:
        outs = np.zeros((B, T, H), np.float32)
        for t in range(T):
            x_t = inp[:, t, :]
            h_new = np.tanh(x_t @ wih + h @ whh + b)
            m = (t < lengths)[:, None].astype(np.float32)
            outs[:, t, :] = m * h_new
            h = m * h_new + (1.0 - m) * h
        feats.append(outs)
        hns.append(h.copy())
        inp = outs
    return np.concatenate(feats, -1), np.stack(hns, 0)


if __name__ == "__main__":
    key = jax.random.PRNGKey(0)
    k_emb, k_w, k_tok = jax.random.split(key, 3)

    # deterministic parameters (PyTorch nn.RNN-style init; weights stored
    # pre-transposed so the kernel computes x @ W)
    embed_table = 0.1 * jax.random.normal(k_emb, (VOCAB, EMBED), jnp.float32)
    embed_table = embed_table.at[PAD].set(0.0)     # nn.Embedding padding_idx row

    layer_weights = []
    kw = k_w
    scale = 1.0 / np.sqrt(HIDDEN)
    for layer in range(LAYERS):
        in_dim = EMBED if layer == 0 else HIDDEN
        kw, ka, kb, kc, kd = jax.random.split(kw, 5)
        wih = jax.random.uniform(ka, (in_dim, HIDDEN), jnp.float32, -scale, scale)
        whh = jax.random.uniform(kb, (HIDDEN, HIDDEN), jnp.float32, -scale, scale)
        b_ih = jax.random.uniform(kc, (HIDDEN,), jnp.float32, -scale, scale)
        b_hh = jax.random.uniform(kd, (HIDDEN,), jnp.float32, -scale, scale)
        layer_weights.append((wih, whh, (b_ih + b_hh).reshape(1, HIDDEN)))

    # tokens with trailing padding (padding_idx = 0); varying sequence lengths
    lengths = np.array([8, 5, 3, 6])
    x_np = np.array(jax.random.randint(k_tok, (BATCH, SEQ), 1, VOCAB), dtype=np.int32)
    for b, ln in enumerate(lengths):
        x_np[b, ln:] = PAD
    x = jnp.asarray(x_np)

    features, h_n = sequence_model_full_feature_extractor(x, embed_table, layer_weights)
    features = jax.block_until_ready(features)
    h_n = jax.block_until_ready(h_n)

    ref_feat, ref_hn = reference(
        x_np, np.asarray(embed_table),
        [tuple(np.asarray(w) for w in lw) for lw in layer_weights])

    assert features.shape == (BATCH, SEQ, LAYERS * HIDDEN)
    assert h_n.shape == (LAYERS, BATCH, HIDDEN)
    np.testing.assert_allclose(np.asarray(features), ref_feat, rtol=2e-3, atol=2e-3)
    np.testing.assert_allclose(np.asarray(h_n), ref_hn, rtol=2e-3, atol=2e-3)

    print("KERNEL_OK")
</pallas_src>

<mosaic_0001>
module attributes {stable_mosaic.version = 11 : i64} {
  func.func @kernel(%arg0: memref<64x1xi32, #tpu.memory_space<vmem>>, %arg1: memref<64x32xf32, #tpu.memory_space<vmem>>, %arg2: memref<128x32xf32, #tpu.memory_space<vmem>>, %arg3: memref<32x32xf32, #tpu.memory_space<vmem>>, %arg4: memref<1x32xf32, #tpu.memory_space<vmem>>, %arg5: memref<32x32xf32, #tpu.memory_space<vmem>>, %arg6: memref<32x32xf32, #tpu.memory_space<vmem>>, %arg7: memref<1x32xf32, #tpu.memory_space<vmem>>, %arg8: memref<8x512xf32, #tpu.memory_space<vmem>>, %arg9: memref<16x32xf32, #tpu.memory_space<vmem>>, %arg10: memref<64x32xf32, #tpu.memory_space<vmem>>) attributes {dimension_semantics = [], scalar_prefetch = 0 : i64, scratch_operands = 1 : i64, tpu.core_type = #tpu.core_type<tc>} {
    %c0 = arith.constant 0 : index
    %c0_0 = arith.constant 0 : index
    %0 = vector.load %arg0[%c0, %c0_0] : memref<64x1xi32, #tpu.memory_space<vmem>>, vector<64x1xi32>
    %1 = tpu.iota {dimensions = array<i32: 1>} : vector<64x128xi32>
    %2 = vector.broadcast %0 : vector<64x1xi32> to vector<64x128xi32>
    %3 = arith.cmpi eq, %1, %2 : vector<64x128xi32>
    %4 = arith.extui %3 : vector<64x128xi1> to vector<64x128xi32>
    %5 = arith.sitofp %4 : vector<64x128xi32> to vector<64x128xf32>
    %c0_1 = arith.constant 0 : index
    %c0_2 = arith.constant 0 : index
    %6 = vector.load %arg1[%c0_1, %c0_2] : memref<64x32xf32, #tpu.memory_space<vmem>>, vector<64x32xf32>
    %cst = arith.constant 1.000000e+00 : f32
    %7 = vector.broadcast %cst : f32 to vector<64x32xf32>
    %8 = arith.subf %7, %6 : vector<64x32xf32>
    %cst_3 = arith.constant 0.000000e+00 : f32
    %9 = vector.broadcast %cst_3 : f32 to vector<8x32xf32>
    %c0_4 = arith.constant 0 : index
    %c0_5 = arith.constant 0 : index
    %10 = vector.load %arg3[%c0_4, %c0_5] : memref<32x32xf32, #tpu.memory_space<vmem>>, vector<32x32xf32>
    %c0_6 = arith.constant 0 : index
    %c0_7 = arith.constant 0 : index
    %11 = vector.load %arg4[%c0_6, %c0_7] : memref<1x32xf32, #tpu.memory_space<vmem>>, vector<1x32xf32>
    %c0_8 = arith.constant 0 : index
    %c0_9 = arith.constant 0 : index
    %12 = vector.load %arg2[%c0_8, %c0_9] : memref<128x32xf32, #tpu.memory_space<vmem>>, vector<128x32xf32>
    %cst_10 = arith.constant dense<0.000000e+00> : vector<64x32xf32>
    %13 = tpu.matmul %5, %12, %cst_10 {dimension_numbers = #tpu.dot_dimension_numbers<[1], [0], [0], [1], [0, 0, 1, 1], [], []>} : vector<64x128xf32>, vector<128x32xf32>, vector<64x32xf32> -> vector<64x32xf32>
    %14 = vector.broadcast %11 : vector<1x32xf32> to vector<64x32xf32>
    %15 = arith.addf %13, %14 : vector<64x32xf32>
    %16 = vector.extract_strided_slice %15 {offsets = [0, 0], sizes = [8, 32], strides = [1, 1]} : vector<64x32xf32> to vector<8x32xf32>
    %cst_11 = arith.constant dense<0.000000e+00> : vector<8x32xf32>
    %17 = tpu.matmul %9, %10, %cst_11 {dimension_numbers = #tpu.dot_dimension_numbers<[1], [0], [0], [1], [0, 0, 1, 1], [], []>} : vector<8x32xf32>, vector<32x32xf32>, vector<8x32xf32> -> vector<8x32xf32>
    %18 = arith.addf %16, %17 : vector<8x32xf32>
    %19 = math.tanh %18 : vector<8x32xf32>
    %20 = vector.extract_strided_slice %6 {offsets = [0, 0], sizes = [8, 32], strides = [1, 1]} : vector<64x32xf32> to vector<8x32xf32>
    %21 = arith.mulf %20, %19 : vector<8x32xf32>
    %22 = vector.extract_strided_slice %8 {offsets = [0, 0], sizes = [8, 32], strides = [1, 1]} : vector<64x32xf32> to vector<8x32xf32>
    %23 = arith.mulf %22, %9 : vector<8x32xf32>
    %24 = arith.addf %21, %23 : vector<8x32xf32>
    %c0_12 = arith.constant 0 : index
    %c0_13 = arith.constant 0 : index
    %25 = vector.load %arg8[%c0_12, %c0_13] : memref<8x512xf32, #tpu.memory_space<vmem>>, vector<8x32xf32>
    tpu.vector_store %arg8[%c0_12, %c0_13], %21 {strides = array<i32>} : memref<8x512xf32, #tpu.memory_space<vmem>>, vector<8x32xf32>,
    %c0_14 = arith.constant 0 : index
    %c0_15 = arith.constant 0 : index
    %26 = vector.load %arg10[%c0_14, %c0_15] : memref<64x32xf32, #tpu.memory_space<vmem>>, vector<8x32xf32>
    tpu.vector_store %arg10[%c0_14, %c0_15], %21 {strides = array<i32>} : memref<64x32xf32, #tpu.memory_space<vmem>>, vector<8x32xf32>,
    %27 = vector.extract_strided_slice %15 {offsets = [8, 0], sizes = [8, 32], strides = [1, 1]} : vector<64x32xf32> to vector<8x32xf32>
    %cst_16 = arith.constant dense<0.000000e+00> : vector<8x32xf32>
    %28 = tpu.matmul %24, %10, %cst_16 {dimension_numbers = #tpu.dot_dimension_numbers<[1], [0], [0], [1], [0, 0, 1, 1], [], []>} : vector<8x32xf32>, vector<32x32xf32>, vector<8x32xf32> -> vector<8x32xf32>
    %29 = arith.addf %27, %28 : vector<8x32xf32>
    %30 = math.tanh %29 : vector<8x32xf32>
    %31 = vector.extract_strided_slice %6 {offsets = [8, 0], sizes = [8, 32], strides = [1, 1]} : vector<64x32xf32> to vector<8x32xf32>
    %32 = arith.mulf %31, %30 : vector<8x32xf32>
    %33 = vector.extract_strided_slice %8 {offsets = [8, 0], sizes = [8, 32], strides = [1, 1]} : vector<64x32xf32> to vector<8x32xf32>
    %34 = arith.mulf %33, %24 : vector<8x32xf32>
    %35 = arith.addf %32, %34 : vector<8x32xf32>
    %c0_17 = arith.constant 0 : index
    %c64 = arith.constant 64 : index
    %36 = vector.load %arg8[%c0_17, %c64] : memref<8x512xf32, #tpu.memory_space<vmem>>, vector<8x32xf32>
    tpu.vector_store %arg8[%c0_17, %c64], %32 {strides = array<i32>} : memref<8x512xf32, #tpu.memory_space<vmem>>, vector<8x32xf32>,
    %c8 = arith.constant 8 : index
    %c0_18 = arith.constant 0 : index
    %37 = vector.load %arg10[%c8, %c0_18] : memref<64x32xf32, #tpu.memory_space<vmem>>, vector<8x32xf32>
    tpu.vector_store %arg10[%c8, %c0_18], %32 {strides = array<i32>} : memref<64x32xf32, #tpu.memory_space<vmem>>, vector<8x32xf32>,
    %38 = vector.extract_strided_slice %15 {offsets = [16, 0], sizes = [8, 32], strides = [1, 1]} : vector<64x32xf32> to vector<8x32xf32>
    %cst_19 = arith.constant dense<0.000000e+00> : vector<8x32xf32>
    %39 = tpu.matmul %35, %10, %cst_19 {dimension_numbers = #tpu.dot_dimension_numbers<[1], [0], [0], [1], [0, 0, 1, 1], [], []>} : vector<8x32xf32>, vector<32x32xf32>, vector<8x32xf32> -> vector<8x32xf32>
    %40 = arith.addf %38, %39 : vector<8x32xf32>
    %41 = math.tanh %40 : vector<8x32xf32>
    %42 = vector.extract_strided_slice %6 {offsets = [16, 0], sizes = [8, 32], strides = [1, 1]} : vector<64x32xf32> to vector<8x32xf32>
    %43 = arith.mulf %42, %41 : vector<8x32xf32>
    %44 = vector.extract_strided_slice %8 {offsets = [16, 0], sizes = [8, 32], strides = [1, 1]} : vector<64x32xf32> to vector<8x32xf32>
    %45 = arith.mulf %44, %35 : vector<8x32xf32>
    %46 = arith.addf %43, %45 : vector<8x32xf32>
    %c0_20 = arith.constant 0 : index
    %c128 = arith.constant 128 : index
    %47 = vector.load %arg8[%c0_20, %c128] : memref<8x512xf32, #tpu.memory_space<vmem>>, vector<8x32xf32>
    tpu.vector_store %arg8[%c0_20, %c128], %43 {strides = array<i32>} : memref<8x512xf32, #tpu.memory_space<vmem>>, vector<8x32xf32>,
    %c16 = arith.constant 16 : index
    %c0_21 = arith.constant 0 : index
    %48 = vector.load %arg10[%c16, %c0_21] : memref<64x32xf32, #tpu.memory_space<vmem>>, vector<8x32xf32>
    tpu.vector_store %arg10[%c16, %c0_21], %43 {strides = array<i32>} : memref<64x32xf32, #tpu.memory_space<vmem>>, vector<8x32xf32>,
    %49 = vector.extract_strided_slice %15 {offsets = [24, 0], sizes = [8, 32], strides = [1, 1]} : vector<64x32xf32> to vector<8x32xf32>
    %cst_22 = arith.constant dense<0.000000e+00> : vector<8x32xf32>
    %50 = tpu.matmul %46, %10, %cst_22 {dimension_numbers = #tpu.dot_dimension_numbers<[1], [0], [0], [1], [0, 0, 1, 1], [], []>} : vector<8x32xf32>, vector<32x32xf32>, vector<8x32xf32> -> vector<8x32xf32>
    %51 = arith.addf %49, %50 : vector<8x32xf32>
    %52 = math.tanh %51 : vector<8x32xf32>
    %53 = vector.extract_strided_slice %6 {offsets = [24, 0], sizes = [8, 32], strides = [1, 1]} : vector<64x32xf32> to vector<8x32xf32>
    %54 = arith.mulf %53, %52 : vector<8x32xf32>
    %55 = vector.extract_strided_slice %8 {offsets = [24, 0], sizes = [8, 32], strides = [1, 1]} : vector<64x32xf32> to vector<8x32xf32>
    %56 = arith.mulf %55, %46 : vector<8x32xf32>
    %57 = arith.addf %54, %56 : vector<8x32xf32>
    %c0_23 = arith.constant 0 : index
    %c192 = arith.constant 192 : index
    %58 = vector.load %arg8[%c0_23, %c192] : memref<8x512xf32, #tpu.memory_space<vmem>>, vector<8x32xf32>
    tpu.vector_store %arg8[%c0_23, %c192], %54 {strides = array<i32>} : memref<8x512xf32, #tpu.memory_space<vmem>>, vector<8x32xf32>,
    %c24 = arith.constant 24 : index
    %c0_24 = arith.constant 0 : index
    %59 = vector.load %arg10[%c24, %c0_24] : memref<64x32xf32, #tpu.memory_space<vmem>>, vector<8x32xf32>
    tpu.vector_store %arg10[%c24, %c0_24], %54 {strides = array<i32>} : memref<64x32xf32, #tpu.memory_space<vmem>>, vector<8x32xf32>,
    %60 = vector.extract_strided_slice %15 {offsets = [32, 0], sizes = [8, 32], strides = [1, 1]} : vector<64x32xf32> to vector<8x32xf32>
    %cst_25 = arith.constant dense<0.000000e+00> : vector<8x32xf32>
    %61 = tpu.matmul %57, %10, %cst_25 {dimension_numbers = #tpu.dot_dimension_numbers<[1], [0], [0], [1], [0, 0, 1, 1], [], []>} : vector<8x32xf32>, vector<32x32xf32>, vector<8x32xf32> -> vector<8x32xf32>
    %62 = arith.addf %60, %61 : vector<8x32xf32>
    %63 = math.tanh %62 : vector<8x32xf32>
    %64 = vector.extract_strided_slice %6 {offsets = [32, 0], sizes = [8, 32], strides = [1, 1]} : vector<64x32xf32> to vector<8x32xf32>
    %65 = arith.mulf %64, %63 : vector<8x32xf32>
    %66 = vector.extract_strided_slice %8 {offsets = [32, 0], sizes = [8, 32], strides = [1, 1]} : vector<64x32xf32> to vector<8x32xf32>
    %67 = arith.mulf %66, %57 : vector<8x32xf32>
    %68 = arith.addf %65, %67 : vector<8x32xf32>
    %c0_26 = arith.constant 0 : index
    %c256 = arith.constant 256 : index
    %69 = vector.load %arg8[%c0_26, %c256] : memref<8x512xf32, #tpu.memory_space<vmem>>, vector<8x32xf32>
    tpu.vector_store %arg8[%c0_26, %c256], %65 {strides = array<i32>} : memref<8x512xf32, #tpu.memory_space<vmem>>, vector<8x32xf32>,
    %c32 = arith.constant 32 : index
    %c0_27 = arith.constant 0 : index
    %70 = vector.load %arg10[%c32, %c0_27] : memref<64x32xf32, #tpu.memory_space<vmem>>, vector<8x32xf32>
    tpu.vector_store %arg10[%c32, %c0_27], %65 {strides = array<i32>} : memref<64x32xf32, #tpu.memory_space<vmem>>, vector<8x32xf32>,
    %71 = vector.extract_strided_slice %15 {offsets = [40, 0], sizes = [8, 32], strides = [1, 1]} : vector<64x32xf32> to vector<8x32xf32>
    %cst_28 = arith.constant dense<0.000000e+00> : vector<8x32xf32>
    %72 = tpu.matmul %68, %10, %cst_28 {dimension_numbers = #tpu.dot_dimension_numbers<[1], [0], [0], [1], [0, 0, 1, 1], [], []>} : vector<8x32xf32>, vector<32x32xf32>, vector<8x32xf32> -> vector<8x32xf32>
    %73 = arith.addf %71, %72 : vector<8x32xf32>
    %74 = math.tanh %73 : vector<8x32xf32>
    %75 = vector.extract_strided_slice %6 {offsets = [40, 0], sizes = [8, 32], strides = [1, 1]} : vector<64x32xf32> to vector<8x32xf32>
    %76 = arith.mulf %75, %74 : vector<8x32xf32>
    %77 = vector.extract_strided_slice %8 {offsets = [40, 0], sizes = [8, 32], strides = [1, 1]} : vector<64x32xf32> to vector<8x32xf32>
    %78 = arith.mulf %77, %68 : vector<8x32xf32>
    %79 = arith.addf %76, %78 : vector<8x32xf32>
    %c0_29 = arith.constant 0 : index
    %c320 = arith.constant 320 : index
    %80 = vector.load %arg8[%c0_29, %c320] : memref<8x512xf32, #tpu.memory_space<vmem>>, vector<8x32xf32>
    tpu.vector_store %arg8[%c0_29, %c320], %76 {strides = array<i32>} : memref<8x512xf32, #tpu.memory_space<vmem>>, vector<8x32xf32>,
    %c40 = arith.constant 40 : index
    %c0_30 = arith.constant 0 : index
    %81 = vector.load %arg10[%c40, %c0_30] : memref<64x32xf32, #tpu.memory_space<vmem>>, vector<8x32xf32>
    tpu.vector_store %arg10[%c40, %c0_30], %76 {strides = array<i32>} : memref<64x32xf32, #tpu.memory_space<vmem>>, vector<8x32xf32>,
    %82 = vector.extract_strided_slice %15 {offsets = [48, 0], sizes = [8, 32], strides = [1, 1]} : vector<64x32xf32> to vector<8x32xf32>
    %cst_31 = arith.constant dense<0.000000e+00> : vector<8x32xf32>
    %83 = tpu.matmul %79, %10, %cst_31 {dimension_numbers = #tpu.dot_dimension_numbers<[1], [0], [0], [1], [0, 0, 1, 1], [], []>} : vector<8x32xf32>, vector<32x32xf32>, vector<8x32xf32> -> vector<8x32xf32>
    %84 = arith.addf %82, %83 : vector<8x32xf32>
    %85 = math.tanh %84 : vector<8x32xf32>
    %86 = vector.extract_strided_slice %6 {offsets = [48, 0], sizes = [8, 32], strides = [1, 1]} : vector<64x32xf32> to vector<8x32xf32>
    %87 = arith.mulf %86, %85 : vector<8x32xf32>
    %88 = vector.extract_strided_slice %8 {offsets = [48, 0], sizes = [8, 32], strides = [1, 1]} : vector<64x32xf32> to vector<8x32xf32>
    %89 = arith.mulf %88, %79 : vector<8x32xf32>
    %90 = arith.addf %87, %89 : vector<8x32xf32>
    %c0_32 = arith.constant 0 : index
    %c384 = arith.constant 384 : index
    %91 = vector.load %arg8[%c0_32, %c384] : memref<8x512xf32, #tpu.memory_space<vmem>>, vector<8x32xf32>
    tpu.vector_store %arg8[%c0_32, %c384], %87 {strides = array<i32>} : memref<8x512xf32, #tpu.memory_space<vmem>>, vector<8x32xf32>,
    %c48 = arith.constant 48 : index
    %c0_33 = arith.constant 0 : index
    %92 = vector.load %arg10[%c48, %c0_33] : memref<64x32xf32, #tpu.memory_space<vmem>>, vector<8x32xf32>
    tpu.vector_store %arg10[%c48, %c0_33], %87 {strides = array<i32>} : memref<64x32xf32, #tpu.memory_space<vmem>>, vector<8x32xf32>,
    %93 = vector.extract_strided_slice %15 {offsets = [56, 0], sizes = [8, 32], strides = [1, 1]} : vector<64x32xf32> to vector<8x32xf32>
    %cst_34 = arith.constant dense<0.000000e+00> : vector<8x32xf32>
    %94 = tpu.matmul %90, %10, %cst_34 {dimension_numbers = #tpu.dot_dimension_numbers<[1], [0], [0], [1], [0, 0, 1, 1], [], []>} : vector<8x32xf32>, vector<32x32xf32>, vector<8x32xf32> -> vector<8x32xf32>
    %95 = arith.addf %93, %94 : vector<8x32xf32>
    %96 = math.tanh %95 : vector<8x32xf32>
    %97 = vector.extract_strided_slice %6 {offsets = [56, 0], sizes = [8, 32], strides = [1, 1]} : vector<64x32xf32> to vector<8x32xf32>
    %98 = arith.mulf %97, %96 : vector<8x32xf32>
    %99 = vector.extract_strided_slice %8 {offsets = [56, 0], sizes = [8, 32], strides = [1, 1]} : vector<64x32xf32> to vector<8x32xf32>
    %100 = arith.mulf %99, %90 : vector<8x32xf32>
    %101 = arith.addf %98, %100 : vector<8x32xf32>
    %c0_35 = arith.constant 0 : index
    %c448 = arith.constant 448 : index
    %102 = vector.load %arg8[%c0_35, %c448] : memref<8x512xf32, #tpu.memory_space<vmem>>, vector<8x32xf32>
    tpu.vector_store %arg8[%c0_35, %c448], %98 {strides = array<i32>} : memref<8x512xf32, #tpu.memory_space<vmem>>, vector<8x32xf32>,
    %c56 = arith.constant 56 : index
    %c0_36 = arith.constant 0 : index
    %103 = vector.load %arg10[%c56, %c0_36] : memref<64x32xf32, #tpu.memory_space<vmem>>, vector<8x32xf32>
    tpu.vector_store %arg10[%c56, %c0_36], %98 {strides = array<i32>} : memref<64x32xf32, #tpu.memory_space<vmem>>, vector<8x32xf32>,
    %c0_37 = arith.constant 0 : index
    %c0_38 = arith.constant 0 : index
    %104 = vector.load %arg9[%c0_37, %c0_38] : memref<16x32xf32, #tpu.memory_space<vmem>>, vector<8x32xf32>
    tpu.vector_store %arg9[%c0_37, %c0_38], %101 {strides = array<i32>} : memref<16x32xf32, #tpu.memory_space<vmem>>, vector<8x32xf32>,
    %c0_39 = arith.constant 0 : index
    %c0_40 = arith.constant 0 : index
    %105 = vector.load %arg5[%c0_39, %c0_40] : memref<32x32xf32, #tpu.memory_space<vmem>>, vector<32x32xf32>
    %c0_41 = arith.constant 0 : index
    %c0_42 = arith.constant 0 : index
    %106 = vector.load %arg6[%c0_41, %c0_42] : memref<32x32xf32, #tpu.memory_space<vmem>>, vector<32x32xf32>
    %c0_43 = arith.constant 0 : index
    %c0_44 = arith.constant 0 : index
    %107 = vector.load %arg7[%c0_43, %c0_44] : memref<1x32xf32, #tpu.memory_space<vmem>>, vector<1x32xf32>
    %c0_45 = arith.constant 0 : index
    %c0_46 = arith.constant 0 : index
    %108 = vector.load %arg10[%c0_45, %c0_46] : memref<64x32xf32, #tpu.memory_space<vmem>>, vector<64x32xf32>
    %cst_47 = arith.constant dense<0.000000e+00> : vector<64x32xf32>
    %109 = tpu.matmul %108, %105, %cst_47 {dimension_numbers = #tpu.dot_dimension_numbers<[1], [0], [0], [1], [0, 0, 1, 1], [], []>} : vector<64x32xf32>, vector<32x32xf32>, vector<64x32xf32> -> vector<64x32xf32>
    %110 = vector.broadcast %107 : vector<1x32xf32> to vector<64x32xf32>
    %111 = arith.addf %109, %110 : vector<64x32xf32>
    %112 = vector.extract_strided_slice %111 {offsets = [0, 0], sizes = [8, 32], strides = [1, 1]} : vector<64x32xf32> to vector<8x32xf32>
    %cst_48 = arith.constant dense<0.000000e+00> : vector<8x32xf32>
    %113 = tpu.matmul %101, %106, %cst_48 {dimension_numbers = #tpu.dot_dimension_numbers<[1], [0], [0], [1], [0, 0, 1, 1], [], []>} : vector<8x32xf32>, vector<32x32xf32>, vector<8x32xf32> -> vector<8x32xf32>
    %114 = arith.addf %112, %113 : vector<8x32xf32>
    %115 = math.tanh %114 : vector<8x32xf32>
    %116 = vector.extract_strided_slice %6 {offsets = [0, 0], sizes = [8, 32], strides = [1, 1]} : vector<64x32xf32> to vector<8x32xf32>
    %117 = arith.mulf %116, %115 : vector<8x32xf32>
    %118 = vector.extract_strided_slice %8 {offsets = [0, 0], sizes = [8, 32], strides = [1, 1]} : vector<64x32xf32> to vector<8x32xf32>
    %119 = arith.mulf %118, %101 : vector<8x32xf32>
    %120 = arith.addf %117, %119 : vector<8x32xf32>
    %c0_49 = arith.constant 0 : index
    %c32_50 = arith.constant 32 : index
    %121 = vector.load %arg8[%c0_49, %c32_50] : memref<8x512xf32, #tpu.memory_space<vmem>>, vector<8x32xf32>
    tpu.vector_store %arg8[%c0_49, %c32_50], %117 {strides = array<i32>} : memref<8x512xf32, #tpu.memory_space<vmem>>, vector<8x32xf32>,
    %122 = vector.extract_strided_slice %111 {offsets = [8, 0], sizes = [8, 32], strides = [1, 1]} : vector<64x32xf32> to vector<8x32xf32>
    %cst_51 = arith.constant dense<0.000000e+00> : vector<8x32xf32>
    %123 = tpu.matmul %120, %106, %cst_51 {dimension_numbers = #tpu.dot_dimension_numbers<[1], [0], [0], [1], [0, 0, 1, 1], [], []>} : vector<8x32xf32>, vector<32x32xf32>, vector<8x32xf32> -> vector<8x32xf32>
    %124 = arith.addf %122, %123 : vector<8x32xf32>
    %125 = math.tanh %124 : vector<8x32xf32>
    %126 = vector.extract_strided_slice %6 {offsets = [8, 0], sizes = [8, 32], strides = [1, 1]} : vector<64x32xf32> to vector<8x32xf32>
    %127 = arith.mulf %126, %125 : vector<8x32xf32>
    %128 = vector.extract_strided_slice %8 {offsets = [8, 0], sizes = [8, 32], strides = [1, 1]} : vector<64x32xf32> to vector<8x32xf32>
    %129 = arith.mulf %128, %120 : vector<8x32xf32>
    %130 = arith.addf %127, %129 : vector<8x32xf32>
    %c0_52 = arith.constant 0 : index
    %c96 = arith.constant 96 : index
    %131 = vector.load %arg8[%c0_52, %c96] : memref<8x512xf32, #tpu.memory_space<vmem>>, vector<8x32xf32>
    tpu.vector_store %arg8[%c0_52, %c96], %127 {strides = array<i32>} : memref<8x512xf32, #tpu.memory_space<vmem>>, vector<8x32xf32>,
    %132 = vector.extract_strided_slice %111 {offsets = [16, 0], sizes = [8, 32], strides = [1, 1]} : vector<64x32xf32> to vector<8x32xf32>
    %cst_53 = arith.constant dense<0.000000e+00> : vector<8x32xf32>
    %133 = tpu.matmul %130, %106, %cst_53 {dimension_numbers = #tpu.dot_dimension_numbers<[1], [0], [0], [1], [0, 0, 1, 1], [], []>} : vector<8x32xf32>, vector<32x32xf32>, vector<8x32xf32> -> vector<8x32xf32>
    %134 = arith.addf %132, %133 : vector<8x32xf32>
    %135 = math.tanh %134 : vector<8x32xf32>
    %136 = vector.extract_strided_slice %6 {offsets = [16, 0], sizes = [8, 32], strides = [1, 1]} : vector<64x32xf32> to vector<8x32xf32>
    %137 = arith.mulf %136, %135 : vector<8x32xf32>
    %138 = vector.extract_strided_slice %8 {offsets = [16, 0], sizes = [8, 32], strides = [1, 1]} : vector<64x32xf32> to vector<8x32xf32>
    %139 = arith.mulf %138, %130 : vector<8x32xf32>
    %140 = arith.addf %137, %139 : vector<8x32xf32>
    %c0_54 = arith.constant 0 : index
    %c160 = arith.constant 160 : index
    %141 = vector.load %arg8[%c0_54, %c160] : memref<8x512xf32, #tpu.memory_space<vmem>>, vector<8x32xf32>
    tpu.vector_store %arg8[%c0_54, %c160], %137 {strides = array<i32>} : memref<8x512xf32, #tpu.memory_space<vmem>>, vector<8x32xf32>,
    %142 = vector.extract_strided_slice %111 {offsets = [24, 0], sizes = [8, 32], strides = [1, 1]} : vector<64x32xf32> to vector<8x32xf32>
    %cst_55 = arith.constant dense<0.000000e+00> : vector<8x32xf32>
    %143 = tpu.matmul %140, %106, %cst_55 {dimension_numbers = #tpu.dot_dimension_numbers<[1], [0], [0], [1], [0, 0, 1, 1], [], []>} : vector<8x32xf32>, vector<32x32xf32>, vector<8x32xf32> -> vector<8x32xf32>
    %144 = arith.addf %142, %143 : vector<8x32xf32>
    %145 = math.tanh %144 : vector<8x32xf32>
    %146 = vector.extract_strided_slice %6 {offsets = [24, 0], sizes = [8, 32], strides = [1, 1]} : vector<64x32xf32> to vector<8x32xf32>
    %147 = arith.mulf %146, %145 : vector<8x32xf32>
    %148 = vector.extract_strided_slice %8 {offsets = [24, 0], sizes = [8, 32], strides = [1, 1]} : vector<64x32xf32> to vector<8x32xf32>
    %149 = arith.mulf %148, %140 : vector<8x32xf32>
    %150 = arith.addf %147, %149 : vector<8x32xf32>
    %c0_56 = arith.constant 0 : index
    %c224 = arith.constant 224 : index
    %151 = vector.load %arg8[%c0_56, %c224] : memref<8x512xf32, #tpu.memory_space<vmem>>, vector<8x32xf32>
    tpu.vector_store %arg8[%c0_56, %c224], %147 {strides = array<i32>} : memref<8x512xf32, #tpu.memory_space<vmem>>, vector<8x32xf32>,
    %152 = vector.extract_strided_slice %111 {offsets = [32, 0], sizes = [8, 32], strides = [1, 1]} : vector<64x32xf32> to vector<8x32xf32>
    %cst_57 = arith.constant dense<0.000000e+00> : vector<8x32xf32>
    %153 = tpu.matmul %150, %106, %cst_57 {dimension_numbers = #tpu.dot_dimension_numbers<[1], [0], [0], [1], [0, 0, 1, 1], [], []>} : vector<8x32xf32>, vector<32x32xf32>, vector<8x32xf32> -> vector<8x32xf32>
    %154 = arith.addf %152, %153 : vector<8x32xf32>
    %155 = math.tanh %154 : vector<8x32xf32>
    %156 = vector.extract_strided_slice %6 {offsets = [32, 0], sizes = [8, 32], strides = [1, 1]} : vector<64x32xf32> to vector<8x32xf32>
    %157 = arith.mulf %156, %155 : vector<8x32xf32>
    %158 = vector.extract_strided_slice %8 {offsets = [32, 0], sizes = [8, 32], strides = [1, 1]} : vector<64x32xf32> to vector<8x32xf32>
    %159 = arith.mulf %158, %150 : vector<8x32xf32>
    %160 = arith.addf %157, %159 : vector<8x32xf32>
    %c0_58 = arith.constant 0 : index
    %c288 = arith.constant 288 : index
    %161 = vector.load %arg8[%c0_58, %c288] : memref<8x512xf32, #tpu.memory_space<vmem>>, vector<8x32xf32>
    tpu.vector_store %arg8[%c0_58, %c288], %157 {strides = array<i32>} : memref<8x512xf32, #tpu.memory_space<vmem>>, vector<8x32xf32>,
    %162 = vector.extract_strided_slice %111 {offsets = [40, 0], sizes = [8, 32], strides = [1, 1]} : vector<64x32xf32> to vector<8x32xf32>
    %cst_59 = arith.constant dense<0.000000e+00> : vector<8x32xf32>
    %163 = tpu.matmul %160, %106, %cst_59 {dimension_numbers = #tpu.dot_dimension_numbers<[1], [0], [0], [1], [0, 0, 1, 1], [], []>} : vector<8x32xf32>, vector<32x32xf32>, vector<8x32xf32> -> vector<8x32xf32>
    %164 = arith.addf %162, %163 : vector<8x32xf32>
    %165 = math.tanh %164 : vector<8x32xf32>
    %166 = vector.extract_strided_slice %6 {offsets = [40, 0], sizes = [8, 32], strides = [1, 1]} : vector<64x32xf32> to vector<8x32xf32>
    %167 = arith.mulf %166, %165 : vector<8x32xf32>
    %168 = vector.extract_strided_slice %8 {offsets = [40, 0], sizes = [8, 32], strides = [1, 1]} : vector<64x32xf32> to vector<8x32xf32>
    %169 = arith.mulf %168, %160 : vector<8x32xf32>
    %170 = arith.addf %167, %169 : vector<8x32xf32>
    %c0_60 = arith.constant 0 : index
    %c352 = arith.constant 352 : index
    %171 = vector.load %arg8[%c0_60, %c352] : memref<8x512xf32, #tpu.memory_space<vmem>>, vector<8x32xf32>
    tpu.vector_store %arg8[%c0_60, %c352], %167 {strides = array<i32>} : memref<8x512xf32, #tpu.memory_space<vmem>>, vector<8x32xf32>,
    %172 = vector.extract_strided_slice %111 {offsets = [48, 0], sizes = [8, 32], strides = [1, 1]} : vector<64x32xf32> to vector<8x32xf32>
    %cst_61 = arith.constant dense<0.000000e+00> : vector<8x32xf32>
    %173 = tpu.matmul %170, %106, %cst_61 {dimension_numbers = #tpu.dot_dimension_numbers<[1], [0], [0], [1], [0, 0, 1, 1], [], []>} : vector<8x32xf32>, vector<32x32xf32>, vector<8x32xf32> -> vector<8x32xf32>
    %174 = arith.addf %172, %173 : vector<8x32xf32>
    %175 = math.tanh %174 : vector<8x32xf32>
    %176 = vector.extract_strided_slice %6 {offsets = [48, 0], sizes = [8, 32], strides = [1, 1]} : vector<64x32xf32> to vector<8x32xf32>
    %177 = arith.mulf %176, %175 : vector<8x32xf32>
    %178 = vector.extract_strided_slice %8 {offsets = [48, 0], sizes = [8, 32], strides = [1, 1]} : vector<64x32xf32> to vector<8x32xf32>
    %179 = arith.mulf %178, %170 : vector<8x32xf32>
    %180 = arith.addf %177, %179 : vector<8x32xf32>
    %c0_62 = arith.constant 0 : index
    %c416 = arith.constant 416 : index
    %181 = vector.load %arg8[%c0_62, %c416] : memref<8x512xf32, #tpu.memory_space<vmem>>, vector<8x32xf32>
    tpu.vector_store %arg8[%c0_62, %c416], %177 {strides = array<i32>} : memref<8x512xf32, #tpu.memory_space<vmem>>, vector<8x32xf32>,
    %182 = vector.extract_strided_slice %111 {offsets = [56, 0], sizes = [8, 32], strides = [1, 1]} : vector<64x32xf32> to vector<8x32xf32>
    %cst_63 = arith.constant dense<0.000000e+00> : vector<8x32xf32>
    %183 = tpu.matmul %180, %106, %cst_63 {dimension_numbers = #tpu.dot_dimension_numbers<[1], [0], [0], [1], [0, 0, 1, 1], [], []>} : vector<8x32xf32>, vector<32x32xf32>, vector<8x32xf32> -> vector<8x32xf32>
    %184 = arith.addf %182, %183 : vector<8x32xf32>
    %185 = math.tanh %184 : vector<8x32xf32>
    %186 = vector.extract_strided_slice %6 {offsets = [56, 0], sizes = [8, 32], strides = [1, 1]} : vector<64x32xf32> to vector<8x32xf32>
    %187 = arith.mulf %186, %185 : vector<8x32xf32>
    %188 = vector.extract_strided_slice %8 {offsets = [56, 0], sizes = [8, 32], strides = [1, 1]} : vector<64x32xf32> to vector<8x32xf32>
    %189 = arith.mulf %188, %180 : vector<8x32xf32>
    %190 = arith.addf %187, %189 : vector<8x32xf32>
    %c0_64 = arith.constant 0 : index
    %c480 = arith.constant 480 : index
    %191 = vector.load %arg8[%c0_64, %c480] : memref<8x512xf32, #tpu.memory_space<vmem>>, vector<8x32xf32>
    tpu.vector_store %arg8[%c0_64, %c480], %187 {strides = array<i32>} : memref<8x512xf32, #tpu.memory_space<vmem>>, vector<8x32xf32>,
    %c8_65 = arith.constant 8 : index
    %c0_66 = arith.constant 0 : index
    %192 = vector.load %arg9[%c8_65, %c0_66] : memref<16x32xf32, #tpu.memory_space<vmem>>, vector<8x32xf32>
    tpu.vector_store %arg9[%c8_65, %c0_66], %190 {strides = array<i32>} : memref<16x32xf32, #tpu.memory_space<vmem>>, vector<8x32xf32>,
    return
  }
}

</mosaic_0001>

<bundles_post_ra>
// kernel: sequence_model_full_feature_extractor.1
= control target key start
LH: loop header
LB: loop body
LE: loop exit
PB: predicated region body
PF: predicated region fallthrough
CT: control target
= control target key end

     0   :  { %v2161_v0 = vmov 0   ;;  %v2162_v6 = vmov 0.0   ;;  %vm2163_vm0 = vmmov 0   ;;  %v39_v29 = vlaneseq  ;;  %s2165_s26 = smov 64   ;;  %s2166_s23 = smov 32   ;;  %s2762_s0 = inlined_call_operand.vmem [shape: s32[64,1], index: 0, kind: input, shape index: {}]   ;;  %s2763_s2 = inlined_call_operand.vmem [shape: f32[128,32], index: 2, kind: input, shape index: {}]   ;;  %s2764_s3 = inlined_call_operand.vmem [shape: f32[32,32], index: 3, kind: input, shape index: {}]   ;;  %s2765_s4 = inlined_call_operand.vmem [shape: f32[1,32], index: 4, kind: input, shape index: {}]   ;;  %s2766_s1 = inlined_call_operand.vmem [shape: f32[64,32], index: 1, kind: input, shape index: {}]   ;;  %s2767_s8 = inlined_call_operand.vmem [shape: f32[8,512], index: 8, kind: output, shape index: {0}]   ;;  %s2768_s5 = inlined_call_operand.vmem [shape: f32[32,32], index: 5, kind: input, shape index: {}]   ;;  %s2769_s6 = inlined_call_operand.vmem [shape: f32[32,32], index: 6, kind: input, shape index: {}]   ;;  %s2770_s9 = inlined_call_operand.vmem [shape: f32[16,32], index: 9, kind: output, shape index: {1}]   ;;  %s2771_s7 = inlined_call_operand.vmem [shape: f32[1,32], index: 7, kind: input, shape index: {}]  }
   0x1   :  { %2127 = vset.pattern.permute.xlu0 %v2161_v0  ;;  %v31_v1 = vld [vmem:[%s2762_s0] sm:$0xff]  ;;  %2128 = vset.pattern.permute.xlu1 %v2161_v0  ;;  %v33_v2 = vld [vmem:[%s2762_s0 + $0x10] sm:$0xff]  ;;  %v32_v3 = vld [vmem:[%s2762_s0 + $0x8] sm:$0xff]  ;;  %v2164_v33 = vmov 1.0   ;;  %vm237_vm8 = vcmask 261120   ;;  %vm400_vm10 = vcmask 785920  }
   0x2   :  { %42 = vperm.xlu0 %2127, %v31_v1   ;;  %48 = vperm.xlu1 %2128, %v33_v2   ;;  %v34_v4 = vld [vmem:[%s2762_s0 + $0x18] sm:$0xff]  ;;  %v124_v7 = vld [vmem:[%s2763_s2 + $0x70] sm:$0xff]  ;;  %v123_v8 = vld [vmem:[%s2763_s2 + $0x68] sm:$0xff]  ;;  %v2330_v30 = vand.u32 127, %v39_v29  ;;  %vm1130_vm11 = vcmask 523520   ;;  %vm1214_vm12 = vcmask 1048320  }
   0x3   :  { %v125_v5 = vld [vmem:[%s2763_s2 + $0x78] sm:$0xff]  ;;  %1924 = vmatprep.subr.mxu1 %v2162_v6  ;;  %1932 = vmatprep.mubr.msk.f32.mxu1 %vm2163_vm0, %v2162_v6  ;;  %v35_v9 = vld [vmem:[%s2762_s0 + $0x20] sm:$0xff]  ;;  %v36_v10 = vld [vmem:[%s2762_s0 + $0x28] sm:$0xff] }
   0x4   :  { %1880 = vmatprep.subr.mxu0 %v125_v5  ;;  %v2251_v11 = vld [vmem:[%s2764_s3 + $0x18] sm:$0xff]  ;;  %v122_v12 = vld [vmem:[%s2763_s2 + $0x60] sm:$0xff]  ;;  %v2260_v13 = vld [vmem:[%s2764_s3 + $0x10] sm:$0xff] }
   0x5   :  { %1881 = vmatpush3.msra.mxu0 %v125_v5  ;;  %1925 = vmatpush3.msra.mxu1 %v2251_v11  ;;  %v37_v14 = vld [vmem:[%s2762_s0 + $0x30] sm:$0xff]  ;;  %v121_v15 = vld [vmem:[%s2763_s2 + $0x58] sm:$0xff]  ;;  %v2273_v16 = vld [vmem:[%s2764_s3 + $0x8] sm:$0xff] }
   0x6   :  { %45 = vperm.xlu0 %2127, %v32_v3   ;;  %51 = vperm.xlu1 %2128, %v34_v4   ;;  %v120_v17 = vld [vmem:[%s2763_s2 + $0x50] sm:$0xff]  ;;  %v2282_v18 = vld [vmem:[%s2764_s3] sm:$0xff]  ;;  %v119_v19 = vld [vmem:[%s2763_s2 + $0x48] sm:$0xff] }
   0x7   :  { %1882 = vmatprep.subr.mxu0 %v124_v7  ;;  %1926 = vmatprep.subr.mxu1 %v2162_v6  ;;  %v118_v20 = vld [vmem:[%s2763_s2 + $0x40] sm:$0xff]  ;;  %v117_v21 = vld [vmem:[%s2763_s2 + $0x38] sm:$0xff]  ;;  %v116_v22 = vld [vmem:[%s2763_s2 + $0x30] sm:$0xff] }
   0x8   :  { %1883 = vmatpush3.msra.mxu0 %v124_v7  ;;  %1927 = vmatpush3.msra.mxu1 %v2260_v13  ;;  %v115_v23 = vld [vmem:[%s2763_s2 + $0x28] sm:$0xff]  ;;  %v114_v24 = vld [vmem:[%s2763_s2 + $0x20] sm:$0xff]  ;;  %v113_v25 = vld [vmem:[%s2763_s2 + $0x18] sm:$0xff] }
   0x9   :  { %1884 = vmatprep.subr.mxu0 %v123_v8  ;;  %1928 = vmatprep.subr.mxu1 %v2162_v6  ;;  %v112_v26 = vld [vmem:[%s2763_s2 + $0x10] sm:$0xff]  ;;  %v111_v27 = vld [vmem:[%s2763_s2 + $0x8] sm:$0xff]  ;;  %v110_v28 = vld [vmem:[%s2763_s2] sm:$0xff] }
   0xa   :  { %54 = vperm.xlu0 %2127, %v35_v9   ;;  %57 = vperm.xlu1 %2128, %v36_v10   ;;  %v38_v41 = vld [vmem:[%s2762_s0 + $0x38] sm:$0xff]  ;;  %v2353_v43 = vld [vmem:[%s2765_s4] ss:$0 sm:$0xff]  ;;  %v2388_v58 = vld [vmem:[%s2766_s1 + $0x8] sm:$0xff]  ;;  %s2167_s0 = smov 96  }
   0xb   :  { %1885 = vmatpush3.msra.mxu0 %v123_v8  ;;  %1929 = vmatpush3.msra.mxu1 %v2273_v16  ;;  %v2359_v47 = vld [vmem:[%s2766_s1] sm:$0xff]  ;;  %v98_v59 = vsub.f32 1.0, %v2388_v58  ;;  %v2415_v8 = vld [vmem:[%s2766_s1 + $0x10] sm:$0xff] }
   0xc   :  { %1886 = vmatprep.subr.mxu0 %v122_v12  ;;  %1930 = vmatprep.subr.mxu1 %v2162_v6  ;;  %v97_v48 = vsub.f32 1.0, %v2359_v47  ;;  %v99_v9 = vsub.f32 1.0, %v2415_v8 }
   0xd   :  { %1887 = vmatpush3.msra.mxu0 %v122_v12  ;;  %1931 = vmatpush3.msra.mxu1 %v2282_v18 }
   0xe   :  { %60 = vperm.xlu0 %2127, %v37_v14   ;;  %1888 = vmatprep.subr.mxu0 %v121_v15  ;;  %v314_v49 = vmul.f32 0.0, %v97_v48 }
   0xf   :  { %1889 = vmatpush3.msra.mxu0 %v121_v15  ;;  %1933 = vmatmul.mubr.f32.vlgmr.msra.gmra.mxu1 %v2162_v6 }
  0x10   :  { %1890 = vmatprep.subr.mxu0 %v120_v17  ;;  %1935 = vmatprep.subr.mxu1 %v2162_v6 }
  0x11   :  { %1891 = vmatpush3.msra.mxu0 %v120_v17  ;;  %1936 = vmatpush3.msra.mxu1 %v2251_v11 }
  0x12   :  { %1892 = vmatprep.subr.mxu0 %v119_v19  ;;  %1937 = vmatprep.subr.mxu1 %v2162_v6 }
  0x13   :  { %1893 = vmatpush3.msra.mxu0 %v119_v19  ;;  %1938 = vmatpush3.msra.mxu1 %v2260_v13 }
  0x14   :  { %1894 = vmatprep.subr.mxu0 %v118_v20  ;;  %1939 = vmatprep.subr.mxu1 %v2162_v6 }
  0x15   :  { %1895 = vmatpush3.msra.mxu0 %v118_v20  ;;  %1940 = vmatpush3.msra.mxu1 %v2273_v16 }
  0x16   :  { %1896 = vmatprep.subr.mxu0 %v117_v21  ;;  %1941 = vmatprep.subr.mxu1 %v2162_v6 }
  0x17   :  { %1897 = vmatpush3.msra.mxu0 %v117_v21  ;;  %1942 = vmatpush3.msra.mxu1 %v2282_v18 }
  0x18   :  { %1898 = vmatprep.subr.mxu0 %v116_v22  ;;  %1943 = vmatprep.mubr.msk.f32.mxu1 %vm2163_vm0, %v2162_v6 }
  0x19   :  { %1899 = vmatpush3.msra.mxu0 %v116_v22  ;;  %1946 = vmatprep.subr.mxu1 %v2162_v6  ;;  %v2441_v22 = vld [vmem:[%s2766_s1 + $0x18] sm:$0xff] }
  0x1a   :  { %1900 = vmatprep.subr.mxu0 %v115_v23  ;;  %63 = vperm.xlu1 %2128, %v38_v41  }
  0x1b   :  { %1901 = vmatpush3.msra.mxu0 %v115_v23  ;;  %v100_v23 = vsub.f32 1.0, %v2441_v22 }
  0x1c   :  { %1902 = vmatprep.subr.mxu0 %v114_v24 }
  0x1d   :  { %1903 = vmatpush3.msra.mxu0 %v114_v24 }
  0x1e   :  { %1904 = vmatprep.subr.mxu0 %v113_v25 }
  0x1f   :  { %1905 = vmatpush3.msra.mxu0 %v113_v25 }
  0x20   :  { %1906 = vmatprep.subr.mxu0 %v112_v26 }
  0x21   :  { %1907 = vmatpush3.msra.mxu0 %v112_v26 }
  0x22   :  { %1908 = vmatprep.subr.mxu0 %v111_v27 }
  0x23   :  { %1909 = vmatpush3.msra.mxu0 %v111_v27 }
  0x24   :  { %1910 = vmatprep.subr.mxu0 %v110_v28 }
  0x25   :  { %1911 = vmatpush3.msra.mxu0 %v110_v28 }
  0x26   :  { %1979 = vmatprep.subr.mxu0 %v2162_v6 }
  0x7d   :  { %v43_v31 = vpop.permute.xlu0 %42  ;;  %v49_v32 = vpop.permute.xlu1 %48 }
  0x7e   :  { %vm65_vm1 = vcmp.eq.s32.totalorder %v2330_v30, %v43_v31  ;;  %vm67_vm2 = vcmp.eq.s32.totalorder %v2330_v30, %v49_v32 }
  0x7f   :  { %1912 = vmatprep.mubr.msk.f32.mxu0 %vm65_vm1, %v2164_v33 }
  0x81   :  { %v46_v34 = vpop.permute.xlu0 %45  ;;  %v52_v35 = vpop.permute.xlu1 %51 }
  0x82   :  { %vm66_vm3 = vcmp.eq.s32.totalorder %v2330_v30, %v46_v34  ;;  %vm68_vm4 = vcmp.eq.s32.totalorder %v2330_v30, %v52_v35  ;;  %v2467_v35 = vld [vmem:[%s2766_s1 + $0x20] sm:$0xff] }
  0x83   :  { %1913 = vmatmul.mubr.msk.f32.vlgmr.msra.gmra.mxu0 %vm66_vm3, %v2164_v33 }
  0x84   :  { %1915 = vmatprep.mubr.msk.f32.mxu0 %vm67_vm2, %v2164_v33  ;;  %1980 = vmatpush3.msra.mxu0 %v2251_v11 }
  0x85   :  { %v55_v36 = vpop.permute.xlu0 %54  ;;  %v58_v37 = vpop.permute.xlu1 %57  ;;  %1981 = vmatprep.subr.mxu0 %v2162_v6 }
  0x86   :  { %vm69_vm5 = vcmp.eq.s32.totalorder %v2330_v30, %v55_v36  ;;  %1982 = vmatpush3.msra.mxu0 %v2260_v13  ;;  %vm70_vm6 = vcmp.eq.s32.totalorder %v2330_v30, %v58_v37  ;;  %v101_v36 = vsub.f32 1.0, %v2467_v35 }
  0x87   :  { %1916 = vmatmul.mubr.msk.f32.gmra.mxu0 %vm68_vm4, %v2164_v33  ;;  %1983 = vmatprep.subr.mxu0 %v2162_v6 }
  0x88   :  { %1918 = vmatprep.mubr.msk.f32.mxu0 %vm69_vm5, %v2164_v33  ;;  %1984 = vmatpush3.msra.mxu0 %v2273_v16 }
  0x89   :  { %v61_v38 = vpop.permute.xlu0 %60  ;;  %1985 = vmatprep.subr.mxu0 %v2162_v6 }
  0x8a   :  { %vm71_vm7 = vcmp.eq.s32.totalorder %v2330_v30, %v61_v38  ;;  %1986 = vmatpush3.msra.mxu0 %v2282_v18 }
  0x8b   :  { %1919 = vmatmul.mubr.msk.f32.gmra.mxu0 %vm70_vm6, %v2164_v33  ;;  %2001 = vmatprep.subr.mxu0 %v2162_v6 }
  0x8c   :  { %1921 = vmatprep.mubr.msk.f32.mxu0 %vm71_vm7, %v2164_v33 }
  0x95   :  { %v64_v53 = vpop.permute.xlu1 %63 }
  0x96   :  { %vm72_vm9 = vcmp.eq.s32.totalorder %v2330_v30, %v64_v53  ;;  %v898_v53 = vld [vmem:[%s2768_s5 + $0x10] sm:$0xff] }
  0x97   :  { %1922 = vmatmul.mubr.msk.f32.gmra.mxu0 %vm72_vm9, %v2164_v33 }
  0x98   :  { %1987 = vmatprep.mubr.msk.f32.mxu0 %vm2163_vm0, %v2162_v6 }
  0xcf   :  { %v307_v39 = vpop.f32.mrf.mxu1 }
  0xd1   :  { %v1934_v40 = vpop.f32.mrf.mxu1 }
 0x143   :  { %v1914_v42 = vpop.f32.mrf.mxu0 }
 0x144   :  { %v204_v54 = vadd.f32 %v1914_v42, %v2353_v43 }
 0x145   :  { %v198_v44 = vpop.f32.mrf.mxu0 }
 0x146   :  { %v199_v45 = vadd.f32 %v2353_v43, %v198_v44 }
 0x147   :  { %v1917_v1 = vpop.f32.mrf.mxu0 }
 0x148   :  { %v311_v46 = vadd.f32 %v307_v39, %v199_v45  ;;  %v214_v17 = vadd.f32 %v1917_v1, %v2353_v43 }
 0x149   :  { %v208_v2 = vpop.f32.mrf.mxu0 }
 0x14a   :  { %2129 = vtanh.f32 %v311_v46  ;;  %v209_v3 = vadd.f32 %v2353_v43, %v208_v2 }
 0x14b   :  { %v1920_v29 = vpop.f32.mrf.mxu0 }
 0x14d   :  { %v218_v30 = vpop.f32.mrf.mxu0 }
 0x14e   :  { %v219_v31 = vadd.f32 %v2353_v43, %v218_v30 }
 0x157   :  { %v2130_v50 = vpop.eup %2129  ;;  %v2492_v41 = vpop.f32.mrf.mxu0 }
 0x158   :  { %v313_v51 = vmul.f32 %v2130_v50, %v2359_v47 }
 0x159   :  { %v228_v42 = vpop.f32.mrf.mxu0 }
 0x15a   :  { %317 = vst.msk [vmem:[#allocation2] sm:$0xff] %vm237_vm8, %v313_v51  ;;  %v315_v52 = vadd.f32 %v314_v49, %v313_v51  ;;  %316 = vst.msk [vmem:[%s2767_s8] sm:$0xff] %vm237_vm8, %v313_v51  ;;  %v229_v1 = vadd.f32 %v2353_v43, %v228_v42 }
 0x15c   :  { %1944 = vmatmul.mubr.msk.f32.vlgmr.msra.gmra.mxu1 %vm237_vm8, %v315_v52  ;;  %v394_v62 = vmul.f32 %v315_v52, %v98_v59 }
 0x15d   :  { %1947 = vmatpush3.msra.mxu1 %v2251_v11  ;;  %1954 = vmatprep.mubr.msk.f32.mxu1 %vm2163_vm0, %v2162_v6 }
 0x15e   :  { %1948 = vmatprep.subr.mxu1 %v2162_v6 }
 0x15f   :  { %1949 = vmatpush3.msra.mxu1 %v2260_v13 }
 0x160   :  { %1950 = vmatprep.subr.mxu1 %v2162_v6 }
 0x161   :  { %1951 = vmatpush3.msra.mxu1 %v2273_v16 }
 0x162   :  { %1952 = vmatprep.subr.mxu1 %v2162_v6 }
 0x163   :  { %1953 = vmatpush3.msra.mxu1 %v2282_v18 }
 0x164   :  { %1957 = vmatprep.subr.mxu1 %v2162_v6 }
 0x21c   :  { %v387_v55 = vpop.f32.mrf.mxu1 }
 0x21d   :  { %v391_v56 = vadd.f32 %v387_v55, %v204_v54  ;;  %v905_v54 = vld [vmem:[#allocation2] sm:$0xff]  ;;  %v897_v55 = vld [vmem:[%s2768_s5 + $0x8] sm:$0xff] }
 0x21e   :  { %v1945_v57 = vpop.f32.mrf.mxu1 }
 0x21f   :  { %2131 = vtanh.f32 %v391_v56  ;;  %v896_v56 = vld [vmem:[%s2768_s5] sm:$0xff] }
 0x22c   :  { %v2132_v60 = vpop.eup %2131 }
 0x22d   :  { %v393_v61 = vmul.f32 %v2132_v60, %v2388_v58 }
 0x22f   :  { %397 = vrot.lane.b32.xlu0 %v393_v61, %s2165_s26  ;;  %v395_v63 = vadd.f32 %v394_v62, %v393_v61  ;;  %402 = vst.msk [vmem:[#allocation2 + $0x8] sm:$0xff] %vm237_vm8, %v393_v61 }
 0x231   :  { %1955 = vmatmul.mubr.msk.f32.vlgmr.msra.gmra.mxu1 %vm237_vm8, %v395_v63  ;;  %v479_v12 = vmul.f32 %v395_v63, %v99_v9 }
 0x232   :  { %1958 = vmatpush3.msra.mxu1 %v2251_v11  ;;  %1965 = vmatprep.mubr.msk.f32.mxu1 %vm2163_vm0, %v2162_v6 }
 0x233   :  { %1959 = vmatprep.subr.mxu1 %v2162_v6 }
 0x234   :  { %1960 = vmatpush3.msra.mxu1 %v2260_v13 }
 0x235   :  { %1961 = vmatprep.subr.mxu1 %v2162_v6 }
 0x236   :  { %1962 = vmatpush3.msra.mxu1 %v2273_v16  ;;  %v906_v57 = vld [vmem:[#allocation2 + $0x8] sm:$0xff] }
 0x237   :  { %1963 = vmatprep.subr.mxu1 %v2162_v6 }
 0x238   :  { %1964 = vmatpush3.msra.mxu1 %v2282_v18 }
 0x239   :  { %1968 = vmatprep.subr.mxu1 %v2162_v6 }
 0x2a1   :  { %v398_v0 = vpop.permute.xlu0 %397 }
 0x2a2   :  { %401 = vst.msk [vmem:[%s2767_s8] sm:$0xff] %vm400_vm10, %v398_v0 }
 0x2f1   :  { %v472_v4 = vpop.f32.mrf.mxu1 }
 0x2f2   :  { %v476_v5 = vadd.f32 %v472_v4, %v209_v3 }
 0x2f3   :  { %v1956_v7 = vpop.f32.mrf.mxu1 }
 0x2f4   :  { %2133 = vtanh.f32 %v476_v5  ;;  %v2531_v5 = vld [vmem:[%s2766_s1 + $0x30] sm:$0xff] }
 0x2f5   :  { %v103_v7 = vsub.f32 1.0, %v2531_v5 }
 0x301   :  { %v2134_v10 = vpop.eup %2133 }
 0x302   :  { %v478_v14 = vmul.f32 %v2134_v10, %v2415_v8 }
 0x304   :  { %482 = vst.msk [vmem:[#allocation2 + $0x10] sm:$0xff] %vm237_vm8, %v478_v14  ;;  %481 = vst.msk [vmem:[%s2767_s8 + $0x8] sm:$0xff] %vm237_vm8, %v478_v14  ;;  %v480_v15 = vadd.f32 %v479_v12, %v478_v14 }
 0x306   :  { %1966 = vmatmul.mubr.msk.f32.vlgmr.msra.gmra.mxu1 %vm237_vm8, %v480_v15  ;;  %v559_v26 = vmul.f32 %v480_v15, %v100_v23 }
 0x307   :  { %1969 = vmatpush3.msra.mxu1 %v2251_v11  ;;  %1976 = vmatprep.mubr.msk.f32.mxu1 %vm2163_vm0, %v2162_v6 }
 0x308   :  { %1970 = vmatprep.subr.mxu1 %v2162_v6 }
 0x309   :  { %1971 = vmatpush3.msra.mxu1 %v2260_v13 }
 0x30a   :  { %1972 = vmatprep.subr.mxu1 %v2162_v6 }
 0x30b   :  { %1973 = vmatpush3.msra.mxu1 %v2273_v16  ;;  %v907_v60 = vld [vmem:[#allocation2 + $0x10] sm:$0xff] }
 0x30c   :  { %1974 = vmatprep.subr.mxu1 %v2162_v6 }
 0x30d   :  { %1975 = vmatpush3.msra.mxu1 %v2282_v18 }
 0x30e   :  { %1990 = vmatprep.subr.mxu1 %v2162_v6 }
 0x3c6   :  { %v552_v19 = vpop.f32.mrf.mxu1 }
 0x3c7   :  { %v556_v20 = vadd.f32 %v552_v19, %v214_v17  ;;  %v2549_v19 = vld [vmem:[%s2769_s6 + $0x18] sm:$0xff] }
 0x3c8   :  { %v1967_v21 = vpop.f32.mrf.mxu1 }
 0x3c9   :  { %2135 = vtanh.f32 %v556_v20  ;;  %v2554_v20 = vld [vmem:[%s2769_s6 + $0x10] sm:$0xff]  ;;  %v2562_v21 = vld [vmem:[%s2769_s6 + $0x8] sm:$0xff] }
 0x3d6   :  { %v2136_v24 = vpop.eup %2135 }
 0x3d7   :  { %v558_v25 = vmul.f32 %v2136_v24, %v2441_v22  ;;  %v2576_v24 = vld [vmem:[%s2769_s6] sm:$0xff] }
 0x3d9   :  { %562 = vrot.lane.b32.xlu1 %v558_v25, %s2165_s26  ;;  %v560_v27 = vadd.f32 %v559_v26, %v558_v25  ;;  %566 = vst.msk [vmem:[#allocation2 + $0x18] sm:$0xff] %vm237_vm8, %v558_v25  ;;  %v234_v25 = vadd.f32 %v2492_v41, %v2353_v43 }
 0x3db   :  { %1977 = vmatmul.mubr.msk.f32.vlgmr.msra.gmra.mxu1 %vm237_vm8, %v560_v27  ;;  %v643_v38 = vmul.f32 %v560_v27, %v101_v36 }
 0x3dc   :  { %1991 = vmatpush3.msra.mxu1 %v2251_v11  ;;  %1998 = vmatprep.mubr.msk.f32.mxu1 %vm2163_vm0, %v2162_v6 }
 0x3dd   :  { %1992 = vmatprep.subr.mxu1 %v2162_v6 }
 0x3de   :  { %1993 = vmatpush3.msra.mxu1 %v2260_v13 }
 0x3df   :  { %1994 = vmatprep.subr.mxu1 %v2162_v6 }
 0x3e0   :  { %1995 = vmatpush3.msra.mxu1 %v2273_v16  ;;  %v908_v61 = vld [vmem:[#allocation2 + $0x18] sm:$0xff] }
 0x3e1   :  { %1996 = vmatprep.subr.mxu1 %v2162_v6 }
 0x3e2   :  { %1997 = vmatpush3.msra.mxu1 %v2282_v18 }
 0x44b   :  { %v563_v28 = vpop.permute.xlu1 %562 }
 0x44c   :  { %565 = vst.msk [vmem:[%s2767_s8 + $0x8] sm:$0xff] %vm400_vm10, %v563_v28 }
 0x49b   :  { %v636_v32 = vpop.f32.mrf.mxu1 }
 0x49c   :  { %v640_v33 = vadd.f32 %v636_v32, %v219_v31 }
 0x49d   :  { %v1978_v34 = vpop.f32.mrf.mxu1 }
 0x49e   :  { %2137 = vtanh.f32 %v640_v33 }
 0x4ab   :  { %v2138_v37 = vpop.eup %2137 }
 0x4ac   :  { %v642_v39 = vmul.f32 %v2138_v37, %v2467_v35 }
 0x4ae   :  { %646 = vst.msk [vmem:[#allocation2 + $0x20] sm:$0xff] %vm237_vm8, %v642_v39  ;;  %645 = vst.msk [vmem:[%s2767_s8 + $0x10] sm:$0xff] %vm237_vm8, %v642_v39  ;;  %v644_v40 = vadd.f32 %v643_v38, %v642_v39 }
 0x4b0   :  { %1988 = vmatmul.mubr.msk.f32.vlgmr.msra.gmra.mxu0 %vm237_vm8, %v644_v40 }
 0x4b1   :  { %2002 = vmatpush3.msra.mxu0 %v2251_v11  ;;  %2009 = vmatprep.mubr.msk.f32.mxu0 %vm2163_vm0, %v2162_v6  ;;  %v899_v11 = vld [vmem:[%s2768_s5 + $0x18] sm:$0xff] }
 0x4b2   :  { %2003 = vmatprep.subr.mxu0 %v2162_v6  ;;  %2012 = vmatprep.subr.mxu1 %v899_v11 }
 0x4b3   :  { %2004 = vmatpush3.msra.mxu0 %v2260_v13  ;;  %v224_v13 = vadd.f32 %v1920_v29, %v2353_v43  ;;  %v2587_v29 = vld [vmem:[%s2766_s1 + $0x38] sm:$0xff] }
 0x4b4   :  { %2005 = vmatprep.subr.mxu0 %v2162_v6  ;;  %v104_v30 = vsub.f32 1.0, %v2587_v29 }
 0x4b5   :  { %2006 = vmatpush3.msra.mxu0 %v2273_v16  ;;  %v2498_v16 = vld [vmem:[%s2766_s1 + $0x28] sm:$0xff]  ;;  %v909_v62 = vld [vmem:[#allocation2 + $0x20] sm:$0xff] }
 0x4b6   :  { %2007 = vmatprep.subr.mxu0 %v2162_v6 }
 0x4b7   :  { %2008 = vmatpush3.msra.mxu0 %v2282_v18  ;;  %v102_v18 = vsub.f32 1.0, %v2498_v16 }
 0x4b8   :  { %2032 = vmatprep.subr.mxu0 %v2162_v6 }
 0x4b9   :  { %v723_v51 = vmul.f32 %v644_v40, %v102_v18  ;;  %v2620_v40 = vld [vmem:[%s2771_s7] ss:$0 sm:$0xff] }
 0x570   :  { %v716_v44 = vpop.f32.mrf.mxu0 }
 0x571   :  { %v720_v45 = vadd.f32 %v716_v44, %v224_v13 }
 0x572   :  { %v1989_v46 = vpop.f32.mrf.mxu0 }
 0x573   :  { %2139 = vtanh.f32 %v720_v45 }
 0x580   :  { %v2140_v49 = vpop.eup %2139 }
 0x581   :  { %v722_v50 = vmul.f32 %v2140_v49, %v2498_v16 }
 0x583   :  { %726 = vrot.lane.b32.xlu0 %v722_v50, %s2165_s26  ;;  %v724_v52 = vadd.f32 %v723_v51, %v722_v50  ;;  %730 = vst.msk [vmem:[#allocation2 + $0x28] sm:$0xff] %vm237_vm8, %v722_v50 }
 0x585   :  { %1999 = vmatmul.mubr.msk.f32.vlgmr.msra.gmra.mxu1 %vm237_vm8, %v724_v52  ;;  %v807_v12 = vmul.f32 %v724_v52, %v103_v7 }
 0x586   :  { %2013 = vmatpush3.msra.mxu1 %v899_v11  ;;  %2020 = vmatprep.mubr.msk.f32.mxu1 %vm237_vm8, %v905_v54 }
 0x587   :  { %2014 = vmatprep.subr.mxu1 %v898_v53 }
 0x588   :  { %2015 = vmatpush3.msra.mxu1 %v898_v53 }
 0x589   :  { %2016 = vmatprep.subr.mxu1 %v897_v55 }
 0x58a   :  { %2017 = vmatpush3.msra.mxu1 %v897_v55  ;;  %v910_v63 = vld [vmem:[#allocation2 + $0x28] sm:$0xff] }
 0x58b   :  { %2018 = vmatprep.subr.mxu1 %v896_v56 }
 0x58c   :  { %2019 = vmatpush3.msra.mxu1 %v896_v56 }
 0x58d   :  { %2021 = vmatmul.mubr.msk.f32.vlgmr.msra.gmra.mxu1 %vm237_vm8, %v906_v57  ;;  %2054 = vmatprep.subr.mxu1 %v2162_v6 }
 0x58e   :  { %2023 = vmatprep.mubr.msk.f32.mxu1 %vm237_vm8, %v907_v60  ;;  %2055 = vmatpush3.msra.mxu1 %v2549_v19 }
 0x58f   :  { %2056 = vmatprep.subr.mxu1 %v2162_v6 }
 0x590   :  { %2057 = vmatpush3.msra.mxu1 %v2554_v20 }
 0x591   :  { %2024 = vmatmul.mubr.msk.f32.gmra.mxu1 %vm237_vm8, %v908_v61  ;;  %2058 = vmatprep.subr.mxu1 %v2162_v6 }
 0x592   :  { %2026 = vmatprep.mubr.msk.f32.mxu1 %vm237_vm8, %v909_v62  ;;  %2059 = vmatpush3.msra.mxu1 %v2562_v21 }
 0x593   :  { %2060 = vmatprep.subr.mxu1 %v2162_v6 }
 0x594   :  { %2061 = vmatpush3.msra.mxu1 %v2576_v24 }
 0x595   :  { %2027 = vmatmul.mubr.msk.f32.gmra.mxu1 %vm237_vm8, %v910_v63  ;;  %2076 = vmatprep.subr.mxu1 %v2162_v6 }
 0x5f5   :  { %v727_v0 = vpop.permute.xlu0 %726 }
 0x5f6   :  { %729 = vst.msk [vmem:[%s2767_s8 + $0x10] sm:$0xff] %vm400_vm10, %v727_v0 }
 0x645   :  { %v800_v2 = vpop.f32.mrf.mxu1 }
 0x646   :  { %v804_v3 = vadd.f32 %v800_v2, %v229_v1 }
 0x647   :  { %v2000_v4 = vpop.f32.mrf.mxu1 }
 0x648   :  { %2141 = vtanh.f32 %v804_v3 }
 0x64d   :  { %v2022_v38 = vpop.f32.mrf.mxu1 }
 0x64f   :  { %v1009_v39 = vpop.f32.mrf.mxu1 }
 0x650   :  { %v1010_v11 = vadd.f32 %v2620_v40, %v1009_v39 }
 0x655   :  { %v2142_v10 = vpop.eup %2141 }
 0x656   :  { %v806_v14 = vmul.f32 %v2142_v10, %v2531_v5 }
 0x658   :  { %810 = vst.msk [vmem:[#allocation2 + $0x30] sm:$0xff] %vm237_vm8, %v806_v14  ;;  %809 = vst.msk [vmem:[%s2767_s8 + $0x18] sm:$0xff] %vm237_vm8, %v806_v14  ;;  %v808_v15 = vadd.f32 %v807_v12, %v806_v14 }
 0x65a   :  { %2010 = vmatmul.mubr.msk.f32.vlgmr.msra.gmra.mxu0 %vm237_vm8, %v808_v15  ;;  %v887_v33 = vmul.f32 %v808_v15, %v104_v30 }
 0x65b   :  { %2040 = vmatprep.mubr.msk.f32.mxu0 %vm2163_vm0, %v2162_v6  ;;  %2033 = vmatpush3.msra.mxu0 %v2549_v19 }
 0x65c   :  { %2034 = vmatprep.subr.mxu0 %v2162_v6 }
 0x65d   :  { %2035 = vmatpush3.msra.mxu0 %v2554_v20 }
 0x65e   :  { %2036 = vmatprep.subr.mxu0 %v2162_v6 }
 0x65f   :  { %v911_v17 = vld [vmem:[#allocation2 + $0x30] sm:$0xff]  ;;  %2037 = vmatpush3.msra.mxu0 %v2562_v21 }
 0x660   :  { %2029 = vmatprep.mubr.msk.f32.mxu1 %vm237_vm8, %v911_v17  ;;  %2038 = vmatprep.subr.mxu0 %v2162_v6 }
 0x661   :  { %2039 = vmatpush3.msra.mxu0 %v2576_v24 }
 0x662   :  { %2043 = vmatprep.subr.mxu0 %v2162_v6 }
 0x71a   :  { %v880_v26 = vpop.f32.mrf.mxu0 }
 0x71b   :  { %v884_v27 = vadd.f32 %v880_v26, %v234_v25 }
 0x71c   :  { %v2011_v28 = vpop.f32.mrf.mxu0 }
 0x71d   :  { %2143 = vtanh.f32 %v884_v27 }
 0x72a   :  { %v2144_v31 = vpop.eup %2143 }
 0x72b   :  { %v886_v32 = vmul.f32 %v2144_v31, %v2587_v29 }
 0x72d   :  { %890 = vrot.lane.b32.xlu1 %v886_v32, %s2165_s26  ;;  %v888_v43 = vadd.f32 %v887_v33, %v886_v32  ;;  %894 = vst.msk [vmem:[#allocation2 + $0x38] sm:$0xff] %vm237_vm8, %v886_v32 }
 0x72f   :  { %2041 = vmatmul.mubr.msk.f32.vlgmr.msra.gmra.mxu0 %vm237_vm8, %v888_v43  ;;  %895 = vst.msk [vmem:[%s2770_s9] sm:$0xff] %vm237_vm8, %v888_v43  ;;  %v1124_v46 = vmul.f32 %v888_v43, %v97_v48  ;;  %v1015_v48 = vadd.f32 %v2022_v38, %v2620_v40 }
 0x730   :  { %2044 = vmatpush3.msra.mxu0 %v2549_v19  ;;  %2051 = vmatprep.mubr.msk.f32.mxu0 %vm2163_vm0, %v2162_v6 }
 0x731   :  { %2045 = vmatprep.subr.mxu0 %v2162_v6 }
 0x732   :  { %2046 = vmatpush3.msra.mxu0 %v2554_v20 }
 0x733   :  { %2047 = vmatprep.subr.mxu0 %v2162_v6 }
 0x734   :  { %v912_v34 = vld [vmem:[#allocation2 + $0x38] sm:$0xff]  ;;  %2048 = vmatpush3.msra.mxu0 %v2562_v21 }
 0x735   :  { %2030 = vmatmul.mubr.msk.f32.gmra.mxu1 %vm237_vm8, %v912_v34  ;;  %2049 = vmatprep.subr.mxu0 %v2162_v6 }
 0x736   :  { %2050 = vmatpush3.msra.mxu0 %v2576_v24  ;;  %2062 = vmatprep.mubr.msk.f32.mxu1 %vm2163_vm0, %v2162_v6 }
 0x737   :  { %2065 = vmatprep.subr.mxu0 %v2162_v6 }
 0x79f   :  { %v891_v37 = vpop.permute.xlu1 %890 }
 0x7a0   :  { %893 = vst.msk [vmem:[%s2767_s8 + $0x18] sm:$0xff] %vm400_vm10, %v891_v37 }
 0x7ef   :  { %v1117_v41 = vpop.f32.mrf.mxu0 }
 0x7f0   :  { %v1121_v42 = vadd.f32 %v1117_v41, %v1010_v11 }
 0x7f1   :  { %v2042_v13 = vpop.f32.mrf.mxu0 }
 0x7f2   :  { %2145 = vtanh.f32 %v1121_v42 }
 0x7ff   :  { %v2146_v44 = vpop.eup %2145 }
 0x800   :  { %v1123_v45 = vmul.f32 %v2146_v44, %v2359_v47 }
 0x802   :  { %1127 = vrot.lane.b32.xlu0 %v1123_v45, %s2166_s23  ;;  %v1125_v49 = vadd.f32 %v1124_v46, %v1123_v45 }
 0x804   :  { %2052 = vmatmul.mubr.msk.f32.vlgmr.msra.gmra.mxu0 %vm237_vm8, %v1125_v49  ;;  %v1208_v55 = vmul.f32 %v1125_v49, %v98_v59  ;;  %v2025_v59 = vpop.f32.mrf.mxu1 }
 0x805   :  { %2066 = vmatpush3.msra.mxu0 %v2549_v19  ;;  %2073 = vmatprep.mubr.msk.f32.mxu0 %vm2163_vm0, %v2162_v6 }
 0x806   :  { %2067 = vmatprep.subr.mxu0 %v2162_v6  ;;  %v1019_v57 = vpop.f32.mrf.mxu1 }
 0x807   :  { %2068 = vmatpush3.msra.mxu0 %v2554_v20  ;;  %v1020_v0 = vadd.f32 %v2620_v40, %v1019_v57 }
 0x808   :  { %2069 = vmatprep.subr.mxu0 %v2162_v6  ;;  %v2662_v60 = vpop.f32.mrf.mxu1 }
 0x809   :  { %2070 = vmatpush3.msra.mxu0 %v2562_v21 }
 0x80a   :  { %2071 = vmatprep.subr.mxu0 %v2162_v6  ;;  %v1029_v61 = vpop.f32.mrf.mxu1 }
 0x80b   :  { %2072 = vmatpush3.msra.mxu0 %v2576_v24 }
 0x80c   :  { %2087 = vmatprep.subr.mxu0 %v2162_v6  ;;  %v2664_v62 = vpop.f32.mrf.mxu1 }
 0x80e   :  { %v2666_v63 = vpop.f32.mrf.mxu1 }
 0x80f   :  { %v1040_v13 = vadd.f32 %v2620_v40, %v2666_v63 }
 0x874   :  { %v1128_v47 = vpop.permute.xlu0 %1127 }
 0x875   :  { %1131 = vst.msk [vmem:[%s2767_s8] sm:$0xff] %vm1130_vm11, %v1128_v47 }
 0x8c4   :  { %v1201_v50 = vpop.f32.mrf.mxu0 }
 0x8c5   :  { %v1205_v51 = vadd.f32 %v1201_v50, %v1015_v48  ;;  %v1045_v50 = vadd.f32 %v2664_v62, %v2620_v40 }
 0x8c6   :  { %v2053_v52 = vpop.f32.mrf.mxu0 }
 0x8c7   :  { %2147 = vtanh.f32 %v1205_v51 }
 0x8d4   :  { %v2148_v53 = vpop.eup %2147 }
 0x8d5   :  { %v1207_v54 = vmul.f32 %v2148_v53, %v2388_v58 }
 0x8d7   :  { %1211 = vrot.lane.b32.xlu0 %v1207_v54, %s2167_s0  ;;  %v1209_v56 = vadd.f32 %v1208_v55, %v1207_v54 }
 0x8d9   :  { %2063 = vmatmul.mubr.msk.f32.vlgmr.msra.gmra.mxu1 %vm237_vm8, %v1209_v56  ;;  %v1292_v12 = vmul.f32 %v1209_v56, %v99_v9  ;;  %v1025_v9 = vadd.f32 %v2025_v59, %v2620_v40 }
 0x8da   :  { %2077 = vmatpush3.msra.mxu1 %v2549_v19  ;;  %2084 = vmatprep.mubr.msk.f32.mxu1 %vm2163_vm0, %v2162_v6 }
 0x8db   :  { %2078 = vmatprep.subr.mxu1 %v2162_v6 }
 0x8dc   :  { %2079 = vmatpush3.msra.mxu1 %v2554_v20 }
 0x8dd   :  { %2080 = vmatprep.subr.mxu1 %v2162_v6 }
 0x8de   :  { %2081 = vmatpush3.msra.mxu1 %v2562_v21 }
 0x8df   :  { %2082 = vmatprep.subr.mxu1 %v2162_v6 }
 0x8e0   :  { %2083 = vmatpush3.msra.mxu1 %v2576_v24 }
 0x8e1   :  { %2098 = vmatprep.subr.mxu1 %v2162_v6 }
 0x949   :  { %v1212_v58 = vpop.permute.xlu0 %1211 }
 0x94a   :  { %1215 = vst.msk [vmem:[%s2767_s8] sm:$0xff] %vm1214_vm12, %v1212_v58 }
 0x999   :  { %v1285_v1 = vpop.f32.mrf.mxu1 }
 0x99a   :  { %v1289_v2 = vadd.f32 %v1285_v1, %v1020_v0 }
 0x99b   :  { %v2064_v3 = vpop.f32.mrf.mxu1 }
 0x99c   :  { %2149 = vtanh.f32 %v1289_v2 }
 0x9a9   :  { %v2150_v4 = vpop.eup %2149 }
 0x9aa   :  { %v1291_v10 = vmul.f32 %v2150_v4, %v2415_v8 }
 0x9ac   :  { %1295 = vrot.lane.b32.xlu1 %v1291_v10, %s2166_s23  ;;  %v1293_v14 = vadd.f32 %v1292_v12, %v1291_v10 }
 0x9ae   :  { %2074 = vmatmul.mubr.msk.f32.vlgmr.msra.gmra.mxu0 %vm237_vm8, %v1293_v14  ;;  %v1375_v28 = vmul.f32 %v1293_v14, %v100_v23  ;;  %v1030_v23 = vadd.f32 %v2620_v40, %v1029_v61 }
 0x9af   :  { %2088 = vmatpush3.msra.mxu0 %v2549_v19  ;;  %2095 = vmatprep.mubr.msk.f32.mxu0 %vm2163_vm0, %v2162_v6 }
 0x9b0   :  { %2089 = vmatprep.subr.mxu0 %v2162_v6 }
 0x9b1   :  { %2090 = vmatpush3.msra.mxu0 %v2554_v20 }
 0x9b2   :  { %2091 = vmatprep.subr.mxu0 %v2162_v6 }
 0x9b3   :  { %2092 = vmatpush3.msra.mxu0 %v2562_v21 }
 0x9b4   :  { %2093 = vmatprep.subr.mxu0 %v2162_v6 }
 0x9b5   :  { %2094 = vmatpush3.msra.mxu0 %v2576_v24 }
 0x9b6   :  { %2109 = vmatprep.subr.mxu0 %v2162_v6 }
 0xa1e   :  { %v1296_v8 = vpop.permute.xlu1 %1295 }
 0xa1f   :  { %1298 = vst.msk [vmem:[%s2767_s8 + $0x8] sm:$0xff] %vm1130_vm11, %v1296_v8 }
 0xa6e   :  { %v1368_v15 = vpop.f32.mrf.mxu0 }
 0xa6f   :  { %v1372_v17 = vadd.f32 %v1368_v15, %v1025_v9 }
 0xa70   :  { %v2075_v25 = vpop.f32.mrf.mxu0 }
 0xa71   :  { %2151 = vtanh.f32 %v1372_v17 }
 0xa7e   :  { %v2152_v26 = vpop.eup %2151 }
 0xa7f   :  { %v1374_v27 = vmul.f32 %v2152_v26, %v2441_v22 }
 0xa81   :  { %1378 = vrot.lane.b32.xlu1 %v1374_v27, %s2167_s0  ;;  %v1376_v31 = vadd.f32 %v1375_v28, %v1374_v27 }
 0xa83   :  { %2085 = vmatmul.mubr.msk.f32.vlgmr.msra.gmra.mxu1 %vm237_vm8, %v1376_v31  ;;  %v1458_v38 = vmul.f32 %v1376_v31, %v101_v36  ;;  %v1035_v36 = vadd.f32 %v2662_v60, %v2620_v40 }
 0xa84   :  { %2099 = vmatpush3.msra.mxu1 %v2549_v19  ;;  %2106 = vmatprep.mubr.msk.f32.mxu1 %vm2163_vm0, %v2162_v6 }
 0xa85   :  { %2100 = vmatprep.subr.mxu1 %v2162_v6 }
 0xa86   :  { %2101 = vmatpush3.msra.mxu1 %v2554_v20 }
 0xa87   :  { %2102 = vmatprep.subr.mxu1 %v2162_v6 }
 0xa88   :  { %2103 = vmatpush3.msra.mxu1 %v2562_v21 }
 0xa89   :  { %2104 = vmatprep.subr.mxu1 %v2162_v6 }
 0xa8a   :  { %2105 = vmatpush3.msra.mxu1 %v2576_v24 }
 0xaf3   :  { %v1379_v22 = vpop.permute.xlu1 %1378 }
 0xaf4   :  { %1381 = vst.msk [vmem:[%s2767_s8 + $0x8] sm:$0xff] %vm1214_vm12, %v1379_v22 }
 0xb43   :  { %v1451_v32 = vpop.f32.mrf.mxu1 }
 0xb44   :  { %v1455_v33 = vadd.f32 %v1451_v32, %v1030_v23 }
 0xb45   :  { %v2086_v43 = vpop.f32.mrf.mxu1 }
 0xb46   :  { %2153 = vtanh.f32 %v1455_v33 }
 0xb53   :  { %v2154_v34 = vpop.eup %2153 }
 0xb54   :  { %v1457_v37 = vmul.f32 %v2154_v34, %v2467_v35 }
 0xb56   :  { %1461 = vrot.lane.b32.xlu0 %v1457_v37, %s2166_s23  ;;  %v1459_v39 = vadd.f32 %v1458_v38, %v1457_v37 }
 0xb58   :  { %2096 = vmatmul.mubr.msk.f32.vlgmr.msra.gmra.mxu0 %vm237_vm8, %v1459_v39 }
 0xb59   :  { %2110 = vmatpush3.msra.mxu0 %v2549_v19  ;;  %2117 = vmatprep.mubr.msk.f32.mxu0 %vm2163_vm0, %v2162_v6 }
 0xb5a   :  { %2111 = vmatprep.subr.mxu0 %v2162_v6 }
 0xb5b   :  { %2112 = vmatpush3.msra.mxu0 %v2554_v20 }
 0xb5c   :  { %2113 = vmatprep.subr.mxu0 %v2162_v6 }
 0xb5d   :  { %2114 = vmatpush3.msra.mxu0 %v2562_v21 }
 0xb5e   :  { %2115 = vmatprep.subr.mxu0 %v2162_v6  ;;  %v1541_v6 = vmul.f32 %v1459_v39, %v102_v18 }
 0xb5f   :  { %2116 = vmatpush3.msra.mxu0 %v2576_v24 }
 0xbc8   :  { %v1462_v35 = vpop.permute.xlu0 %1461 }
 0xbc9   :  { %1464 = vst.msk [vmem:[%s2767_s8 + $0x10] sm:$0xff] %vm1130_vm11, %v1462_v35 }
 0xc18   :  { %v1534_v19 = vpop.f32.mrf.mxu0 }
 0xc19   :  { %v1538_v11 = vadd.f32 %v1534_v19, %v1035_v36 }
 0xc1a   :  { %v2097_v20 = vpop.f32.mrf.mxu0 }
 0xc1b   :  { %2155 = vtanh.f32 %v1538_v11 }
 0xc28   :  { %v2156_v41 = vpop.eup %2155 }
 0xc29   :  { %v1540_v21 = vmul.f32 %v2156_v41, %v2498_v16 }
 0xc2b   :  { %1544 = vrot.lane.b32.xlu0 %v1540_v21, %s2167_s0  ;;  %v1542_v24 = vadd.f32 %v1541_v6, %v1540_v21 }
 0xc2d   :  { %2107 = vmatmul.mubr.msk.f32.vlgmr.msra.gmra.mxu1 %vm237_vm8, %v1542_v24  ;;  %v1624_v49 = vmul.f32 %v1542_v24, %v103_v7 }
 0xc9d   :  { %v1545_v42 = vpop.permute.xlu0 %1544 }
 0xc9e   :  { %1547 = vst.msk [vmem:[%s2767_s8 + $0x10] sm:$0xff] %vm1214_vm12, %v1545_v42 }
 0xced   :  { %v1617_v44 = vpop.f32.mrf.mxu1 }
 0xcee   :  { %v1621_v45 = vadd.f32 %v1617_v44, %v1040_v13 }
 0xcef   :  { %v2108_v46 = vpop.f32.mrf.mxu1 }
 0xcf0   :  { %2157 = vtanh.f32 %v1621_v45 }
 0xcfd   :  { %v2158_v16 = vpop.eup %2157 }
 0xcfe   :  { %v1623_v18 = vmul.f32 %v2158_v16, %v2531_v5 }
 0xd00   :  { %1627 = vrot.lane.b32.xlu1 %v1623_v18, %s2166_s23  ;;  %v1625_v47 = vadd.f32 %v1624_v49, %v1623_v18 }
 0xd02   :  { %2118 = vmatmul.mubr.msk.f32.vlgmr.msra.gmra.mxu0 %vm237_vm8, %v1625_v47  ;;  %v1707_v54 = vmul.f32 %v1625_v47, %v104_v30 }
 0xd72   :  { %v1628_v48 = vpop.permute.xlu1 %1627 }
 0xd73   :  { %1630 = vst.msk [vmem:[%s2767_s8 + $0x18] sm:$0xff] %vm1130_vm11, %v1628_v48 }
 0xdc2   :  { %v1700_v51 = vpop.f32.mrf.mxu0 }
 0xdc3   :  { %v1704_v52 = vadd.f32 %v1700_v51, %v1045_v50 }
 0xdc4   :  { %v2119_v53 = vpop.f32.mrf.mxu0 }
 0xdc5   :  { %2159 = vtanh.f32 %v1704_v52 }
 0xdd2   :  { %v2160_v5 = vpop.eup %2159 }
 0xdd3   :  { %v1706_v7 = vmul.f32 %v2160_v5, %v2587_v29 }
 0xdd5   :  { %1710 = vrot.lane.b32.xlu1 %v1706_v7, %s2167_s0  ;;  %v1708_v55 = vadd.f32 %v1707_v54, %v1706_v7 }
 0xdd7   :  { %1714 = vst.msk [vmem:[%s2770_s9 + $0x8] sm:$0xff] %vm237_vm8, %v1708_v55 }
 0xe47   :  { %v1711_v56 = vpop.permute.xlu1 %1710 }
 0xe48   :  { %1713 = vst.msk [vmem:[%s2767_s8 + $0x18] sm:$0xff] %vm1214_vm12, %v1711_v56 }

</bundles_post_ra>
